<compile_context>
chip_gen: v7x
topology: tpu7x:2x2x1
jax: 0.10.0
libtpu: 0.0.40
codegen_flags: <defaults>
</compile_context>

<pallas_src>
import functools

import jax
import jax.numpy as jnp
from jax import lax
from jax.experimental import pallas as pl
from jax.experimental.pallas import tpu as pltpu


def _round_up(x, m):
    return (x + m - 1) // m * m


def _linear_t_kernel(x_ref, w_ref, b_ref, o_ref):
    # x: (tile_b, in_f), w: (out_f, in_f), b: (out_f, 1)
    # y^T = w @ x^T  via contracting dims ((1,),(1,)) -> (out_f, tile_b).
    # Batch on lanes => unmasked, lane-dense stores of the output block.
    acc = lax.dot_general(
        w_ref[...],
        x_ref[...],
        dimension_numbers=(((1,), (1,)), ((), ())),
        preferred_element_type=jnp.float32,
    )
    o_ref[...] = (acc + b_ref[...]).astype(o_ref.dtype)


def _linear_small(x, weight, b2d):
    """Single-shot path: no grid, whole operands resident in VMEM."""
    B, _ = x.shape
    out_f = weight.shape[0]
    vmem = pl.BlockSpec(memory_space=pltpu.MemorySpace.VMEM)
    # Padded-layout budget: x = 512 B/row, y^T = 32 B/row (+1 MiB slack).
    vmem_limit = min(64 << 20, max(32 << 20, B * (512 + 32) + (1 << 20)))
    return pl.pallas_call(
        _linear_t_kernel,
        out_shape=jax.ShapeDtypeStruct((out_f, B), x.dtype),
        in_specs=[vmem, vmem, vmem],
        out_specs=vmem,
        compiler_params=pltpu.CompilerParams(vmem_limit_bytes=vmem_limit),
    )(x, weight, b2d)


def _linear_tiled(x, weight, b2d, tile_b, vmem_limit):
    """Batch-tiled path: grid over batch only; weight/bias stay resident."""
    B, in_f = x.shape
    out_f = weight.shape[0]
    grid = (pl.cdiv(B, tile_b),)
    # NOTE: when B % tile_b != 0 the last x block reads padded rows; those rows
    # produce garbage lanes in the kernel but Pallas only writes the valid part
    # of the partial output block back to HBM, so the result is correct.
    return pl.pallas_call(
        _linear_t_kernel,
        out_shape=jax.ShapeDtypeStruct((out_f, B), x.dtype),
        grid_spec=pl.GridSpec(
            grid=grid,
            in_specs=[
                pl.BlockSpec((tile_b, in_f), lambda i: (i, 0)),
                pl.BlockSpec((out_f, in_f), lambda i: (0, 0)),
                pl.BlockSpec((out_f, 1), lambda i: (0, 0)),
            ],
            out_specs=pl.BlockSpec((out_f, tile_b), lambda i: (0, i)),
        ),
        compiler_params=pltpu.CompilerParams(
            # Independent batch axis -> shardable across v7x's 2 TensorCores.
            dimension_semantics=("parallel",),
            vmem_limit_bytes=vmem_limit,
        ),
        cost_estimate=pl.CostEstimate(
            flops=2 * B * in_f * out_f,
            transcendentals=0,
            bytes_accessed=4 * (B * in_f + out_f * in_f + out_f + B * out_f),
        ),
    )(x, weight, b2d)


@functools.partial(jax.jit, static_argnames=("tile_b",))
def linear_pallas(x, weight, bias, *, tile_b=8192):
    """y = x @ weight.T + bias, matching nn.Linear semantics.

    x:      (B, in_features)            float32
    weight: (out_features, in_features) float32  (PyTorch convention, NOT transposed)
    bias:   (out_features,)             float32
    """
    B, _ = x.shape
    out_f = weight.shape[0]
    # (out_f,) -> (out_f, 1): broadcasts over the lane (batch) dim of y^T.
    b2d = bias.reshape(out_f, 1)

    if B <= tile_b:
        yT = _linear_small(x, weight, b2d)
    else:
        # Lane dim of the transposed output block => tile must be a multiple of 128.
        # Clamp to ~ceil(B/2) so a 2-TC megacore gets balanced work and grid >= 2.
        tile_eff = min(tile_b, _round_up(pl.cdiv(B, 2), 128))
        tile_eff = max(128, _round_up(tile_eff, 128))
        # Padded VMEM layouts, x2 for double buffering:
        #   x block : tile rows x 128 lanes x 4 B = 512 B/row
        #   yT block: 8 sublanes x tile lanes x 4 B =  32 B/row
        vmem_limit = min(
            64 << 20, max(32 << 20, 2 * tile_eff * (512 + 32) + (1 << 20))
        )
        yT = _linear_tiled(x, weight, b2d, tile_eff, vmem_limit)

    # Tiny (out_f, B) -> (B, out_f) transpose under jit; keeps nn.Linear layout.
    return yT.T


if __name__ == "__main__":
    in_features, out_features = 10, 2

    key = jax.random.PRNGKey(0)
    kx, kw, kb, kx2 = jax.random.split(key, 4)

    # Deterministic init mimicking nn.Linear's uniform(-1/sqrt(fan_in), 1/sqrt(fan_in)).
    bound = 1.0 / (in_features ** 0.5)
    weight = jax.random.uniform(
        kw, (out_features, in_features), minval=-bound, maxval=bound, dtype=jnp.float32
    )
    bias = jax.random.uniform(
        kb, (out_features,), minval=-bound, maxval=bound, dtype=jnp.float32
    )

    # --- Small-batch path (no grid, single shot) ---
    batch = 8
    x = jax.random.normal(kx, (batch, in_features), dtype=jnp.float32)
    y = jax.block_until_ready(linear_pallas(x, weight, bias))
    y_ref = x @ weight.T + bias
    assert y.shape == (batch, out_features)
    assert jnp.allclose(y, y_ref, atol=1e-5, rtol=1e-5)

    # --- Batch-tiled path (forced with a small tile; includes a ragged last block) ---
    big_batch, small_tile = 2000, 512
    x_big = jax.random.normal(kx2, (big_batch, in_features), dtype=jnp.float32)
    y_big = jax.block_until_ready(linear_pallas(x_big, weight, bias, tile_b=small_tile))
    y_big_ref = x_big @ weight.T + bias
    assert y_big.shape == (big_batch, out_features)
    assert jnp.allclose(y_big, y_big_ref, atol=1e-5, rtol=1e-5)

    print("KERNEL_OK")
</pallas_src>

<mosaic_0001>
module attributes {stable_mosaic.version = 11 : i64} {
  func.func @_linear_t_kernel(%arg0: memref<8x10xf32, #tpu.memory_space<vmem>>, %arg1: memref<2x10xf32, #tpu.memory_space<vmem>>, %arg2: memref<2x1xf32, #tpu.memory_space<vmem>>, %arg3: memref<2x8xf32, #tpu.memory_space<vmem>>) attributes {dimension_semantics = [], scalar_prefetch = 0 : i64, scratch_operands = 0 : i64, tpu.core_type = #tpu.core_type<tc>} {
    %c0 = arith.constant 0 : index
    %c0_0 = arith.constant 0 : index
    %0 = vector.load %arg1[%c0, %c0_0] : memref<2x10xf32, #tpu.memory_space<vmem>>, vector<2x10xf32>
    %c0_1 = arith.constant 0 : index
    %c0_2 = arith.constant 0 : index
    %1 = vector.load %arg0[%c0_1, %c0_2] : memref<8x10xf32, #tpu.memory_space<vmem>>, vector<8x10xf32>
    %cst = arith.constant dense<0.000000e+00> : vector<2x8xf32>
    %2 = tpu.matmul %0, %1, %cst {dimension_numbers = #tpu.dot_dimension_numbers<[1], [1], [0], [0], [0, 0, 1, 0], [], []>} : vector<2x10xf32>, vector<8x10xf32>, vector<2x8xf32> -> vector<2x8xf32>
    %c0_3 = arith.constant 0 : index
    %c0_4 = arith.constant 0 : index
    %3 = vector.load %arg2[%c0_3, %c0_4] : memref<2x1xf32, #tpu.memory_space<vmem>>, vector<2x1xf32>
    %4 = vector.broadcast %3 : vector<2x1xf32> to vector<2x8xf32>
    %5 = arith.addf %2, %4 : vector<2x8xf32>
    %c0_5 = arith.constant 0 : index
    %c0_6 = arith.constant 0 : index
    %6 = vector.load %arg3[%c0_5, %c0_6] : memref<2x8xf32, #tpu.memory_space<vmem>>, vector<2x8xf32>
    tpu.vector_store %arg3[%c0_5, %c0_6], %5 {strides = array<i32>} : memref<2x8xf32, #tpu.memory_space<vmem>>, vector<2x8xf32>,
    return
  }
}

</mosaic_0001>

<bundles_post_ra>
// kernel: linear_pallas.1
= control target key start
LH: loop header
LB: loop body
LE: loop exit
PB: predicated region body
PF: predicated region fallthrough
CT: control target
= control target key end

     0   :  { %8 = vsyncpa [#allocation3], 0  ;;  %s247_s0 = inlined_call_operand.hbm [shape: f32[8,10], index: 0, kind: input, shape index: {}]   ;;  %s248_s1 = inlined_call_operand.vmem [shape: f32[2,10], index: 1, kind: input, shape index: {}]   ;;  %s249_s2 = inlined_call_operand.vmem [shape: f32[2,1], index: 2, kind: input, shape index: {}]   ;;  %s250_s3 = inlined_call_operand.hbm [shape: f32[2,8], index: 3, kind: output, shape index: {}]  }
   0x1   :  { %9 = vsyncpa [#allocation4], 0  ;;  %s192_s12 = smov [#allocation2]   ;;  %s144_s16 = scalar_lea.hbm %s247_s0, 128 }
   0x2   :  { %s16_s13 = sshll.u32 %s192_s12, 4  ;;  %p145_p0 = scmp.ne.s32.totalorder %s247_s0, %s144_s16  ;;  %s17_s13 = int_to_ptr.vmem [resolvable:$true] %s16_s13 }
   0x3   :  { %p148_p1 = scmp.lt.u32.totalorder %s144_s16, %s247_s0 }
   0x5   :  { %p150_p2 = pnand %p148_p1, %p145_p0 }
   0x7   :  { %153 = shalt.err (!%p150_p2)
}
   0x8   :  { %s154_s21 = scalar_lea.vmem %s17_s13, 128  ;;  %p159_p4 = scmp.lt.s32.totalorder %s17_s13, %s17_s13 }
   0x9   :  { %p155_p3 = scmp.ne.s32.totalorder %s17_s13, %s154_s21  ;;  %p160_p5 = scmp.lt.s32.totalorder %s154_s21, %s154_s21 }
   0xb   :  { %p161_p6 = por %p160_p5, %p159_p4 }
   0xd   :  { %p162_p7 = pnand %p161_p6, %p155_p3 }
   0xf   :  { %165 = shalt.err (!%p162_p7)
}
  0x10   :  { %19 = dma.hbm_to_vmem [thread:$0]  %s247_s0, 128, %s17_s13, [#allocation3]  }
  0x11   :  { %188 = dma.done.wait [#allocation3], 128  }
  0x12   :  { %189 = vsyncadd [#allocation3], 4294967168  ;;  %v193_v0 = vmov 0.0   ;;  %vm194_vm0 = vmmov 0   ;;  %v195_v1 = vmov 0   ;;  %vm35_vm1 = vcmask 80896  }
  0x13   :  { %133 = vmatprep.subr.mxu0 %v193_v0  ;;  %135 = vmatprep.mubr.msk.f32.mxu0 %vm194_vm0, %v193_v0  ;;  %v28_v2 = vld [vmem:[#allocation2] sm:$0xff]  ;;  %s196_s0 = smov [#allocation5]   ;;  %vm112_vm2 = vcmask 58368  }
  0x14   :  { %143 = vset.pattern.permute.xlu0 %v195_v1  ;;  %v29_v3 = vld [vmem:[%s249_s2] sm:$0x3]  ;;  %134 = vmatpush3.xpose.msk.msra.mxu0 %vm35_vm1, %v28_v2  ;;  %s120_s28 = sshll.u32 %s196_s0, 4  ;;  %s121_s28 = int_to_ptr.vmem [resolvable:$true] %s120_s28 }
  0x15   :  { %v27_v4 = vld [vmem:[%s248_s1] sm:$0x3]  ;;  %32 = vperm.xlu0 %143, %v29_v3   ;;  %s166_s29 = scalar_lea.vmem %s121_s28, 32  ;;  %p171_p9 = scmp.lt.s32.totalorder %s121_s28, %s121_s28 }
  0x16   :  { %p167_p8 = scmp.ne.s32.totalorder %s121_s28, %s166_s29  ;;  %p172_p10 = scmp.lt.s32.totalorder %s166_s29, %s166_s29 }
  0x17   :  { %136 = vmatmul.mubr.msk.f32.vlgmr.msra.gmra.mrb[0].mxu0 %vm35_vm1, %v27_v4 }
  0x18   :  { %p173_p11 = por %p172_p10, %p171_p9 }
  0x1a   :  { %p174_p12 = pnand %p173_p11, %p167_p8 }
  0x94   :  { %v33_v5 = vpop.permute.xlu0 %32 }
  0xea   :  { %v108_v6 = vpop.f32.mrb[0].mxu0 }
  0xeb   :  { %v109_v7 = vadd.f32 %v108_v6, %v33_v5  ;;  %v137_v8 = vpop.f32.mrb[1].mxu0 }
  0xed   :  { %113 = vst.msk [vmem:[#allocation5] sm:$0x3] %vm112_vm2, %v109_v7 }
  0xee   :  { %177 = shalt.err (!%p174_p12)
}
  0xef   :  { %s178_s30 = scalar_lea.hbm %s250_s3, 32 }
  0xf0   :  { %p179_p13 = scmp.ne.s32.totalorder %s250_s3, %s178_s30  ;;  %p182_p0 = scmp.lt.u32.totalorder %s178_s30, %s250_s3 }
  0xf2   :  { %p184_p1 = pnand %p182_p0, %p179_p13 }
  0xf4   :  { %187 = shalt.err (!%p184_p1)
}
  0xf5   :  { %123 = dma.vmem_to_hbm [thread:$0]  %s121_s28, 32, %s250_s3, [#allocation4]  }
  0xf6   :  { %190 = dma.done.wait [#allocation4], 32  }
  0xf7   :  { %191 = vsyncadd [#allocation4], 4294967264 }
  0xf8   :  { %127 = vsyncpa [#allocation3], 1 }
  0xf9   :  { %128 = vsyncpa [#allocation4], 1 }

</bundles_post_ra>
